<compile_context>
chip_gen: v7x
topology: tpu7x:2x2x1
jax: 0.10.0
libtpu: 0.0.40
codegen_flags: <defaults>
</compile_context>

<pallas_src>
import functools

import jax
import jax.numpy as jnp
from jax.experimental import pallas as pl
from jax.experimental.pallas import tpu as pltpu


def _clip_kernel(x_ref, o_ref, *, min_val, max_val):
    x = x_ref[...]
    # torch.clamp(input, min, max): either bound may be None (no clipping).
    # TODO(synk): float bounds on integer dtypes follow jnp cast semantics here,
    # whereas torch.clamp type-promotes (int tensor + float scalar -> float out).
    if min_val is not None:
        x = jnp.maximum(x, jnp.asarray(min_val, dtype=x.dtype))
    if max_val is not None:
        x = jnp.minimum(x, jnp.asarray(max_val, dtype=x.dtype))
    o_ref[...] = x


_LANE_CANDIDATES = (8192, 4096, 2048, 1024, 512, 256, 128)


def _round_up(a, b):
    return -(-a // b) * b


def _choose_rows_per_block(rows, lanes, itemsize, sublane_mult, target_block_bytes):
    bytes_per_row = lanes * itemsize
    rows_per_block = max(
        sublane_mult,
        (target_block_bytes // bytes_per_row) // sublane_mult * sublane_mult,
    )
    rows_per_block = min(rows_per_block, _round_up(rows, sublane_mult))

    # Megacore (v7x: 2 TCs) balance: when the slab is big enough, aim for at
    # least 2 grid steps per core (>= 4 total) and an even total step count so
    # neither core idles on an odd tail and each core overlaps in/out DMAs
    # across its steps.  Costs only a couple of ~0.35us grid steps on v5e/v6e.
    num_cores = 2
    min_steps = 2 * num_cores
    if rows >= min_steps * sublane_mult:
        steps = pl.cdiv(rows, rows_per_block)
        if steps < min_steps:
            rows_per_block = max(
                sublane_mult, _round_up(pl.cdiv(rows, min_steps), sublane_mult)
            )
            steps = pl.cdiv(rows, rows_per_block)
        if steps > 1 and steps % 2 != 0:
            rows_per_block = max(
                sublane_mult, _round_up(pl.cdiv(rows, steps + 1), sublane_mult)
            )
    return rows_per_block


def onnx_clip(
    x,
    min_val=None,
    max_val=None,
    *,
    target_block_bytes=8 * 1024 * 1024,
    small_input_bytes=1 << 20,
    force_pallas=False,
    donate_input=False,
):
    """Elementwise clamp matching OnnxClip.forward (torch.clamp semantics)."""
    orig_shape = x.shape
    orig_dtype = x.dtype
    n_elems = x.size
    itemsize = jnp.dtype(orig_dtype).itemsize

    # No bounds -> identity (matches the module when both attrs are None).
    if min_val is None and max_val is None:
        return x

    # Small-input fast path: pallas_call launch overhead dominates; XLA's fused
    # clip wins on every TPU generation for tiny activations.
    if not force_pallas and n_elems * itemsize < small_input_bytes:
        return jnp.clip(x, min_val, max_val)

    # Ragged sizes: padding + trailing slice would add two full HBM round trips
    # (~3x total traffic for a bandwidth-bound op).  Let XLA's fused clip handle
    # the tail instead.
    if n_elems % 128 != 0:
        return jnp.clip(x, min_val, max_val)

    # Sub-32-bit dtypes pack along sublanes: keep native packing (f32:8 rows,
    # bf16:16, int8/fp8:32).
    sublane_mult = max(8, 32 // itemsize)

    # Flatten into a lane-dense 2D slab (zero-copy reshape).
    lanes = 128
    for cand in _LANE_CANDIDATES:
        if n_elems % cand == 0 and n_elems // cand >= sublane_mult:
            lanes = cand
            break
    rows = n_elems // lanes
    x2d = jnp.reshape(x, (rows, lanes))

    if rows < sublane_mult:
        # Tiny forced input: one block equal to the full array (allowed because
        # block dims equal the array dims).
        rows_per_block = rows
    else:
        rows_per_block = _choose_rows_per_block(
            rows, lanes, itemsize, sublane_mult, target_block_bytes
        )

    grid = (pl.cdiv(rows, rows_per_block),)
    kernel = functools.partial(_clip_kernel, min_val=min_val, max_val=max_val)

    # Alias output onto the input buffer only when the caller donates x;
    # otherwise XLA would insert a defensive copy (extra HBM traffic).
    aliases = {0: 0} if donate_input else {}

    out2d = pl.pallas_call(
        kernel,
        out_shape=jax.ShapeDtypeStruct((rows, lanes), orig_dtype),
        grid_spec=pltpu.PrefetchScalarGridSpec(
            num_scalar_prefetch=0,
            grid=grid,
            in_specs=[pl.BlockSpec((rows_per_block, lanes), lambda i: (i, 0))],
            out_specs=pl.BlockSpec((rows_per_block, lanes), lambda i: (i, 0)),
        ),
        compiler_params=pltpu.CompilerParams(
            dimension_semantics=("parallel",),
            vmem_limit_bytes=48 << 20,
        ),
        input_output_aliases=aliases,
    )(x2d)

    return out2d.reshape(orig_shape)


if __name__ == "__main__":
    key = jax.random.PRNGKey(0)
    # Small NCHW-shaped input consistent with typical conv-net activations.
    x = jax.random.normal(key, (2, 4, 16, 16), dtype=jnp.float32) * 3.0

    min_val = -1.0
    max_val = 1.0
    ref = jnp.clip(x, min_val, max_val)

    # Force the Pallas path so the kernel itself is exercised on TPU.
    out = onnx_clip(x, min_val=min_val, max_val=max_val, force_pallas=True)
    jax.block_until_ready(out)
    assert out.shape == x.shape and out.dtype == x.dtype
    assert jnp.allclose(out, ref), "mismatch vs reference clamp"

    # One-sided and no-bound cases (min=None / max=None).
    out_min_only = onnx_clip(x, min_val=0.0, max_val=None, force_pallas=True)
    out_none = onnx_clip(x, min_val=None, max_val=None, force_pallas=True)
    jax.block_until_ready((out_min_only, out_none))
    assert jnp.allclose(out_min_only, jnp.maximum(x, 0.0))
    assert jnp.allclose(out_none, x)

    # Ragged size (numel % 128 != 0) now takes the XLA fallback (no pad/slice).
    x_ragged = jax.random.normal(jax.random.PRNGKey(1), (3, 5, 7), jnp.float32)
    out_ragged = onnx_clip(x_ragged, min_val=-0.5, max_val=0.5, force_pallas=True)
    jax.block_until_ready(out_ragged)
    assert jnp.allclose(out_ragged, jnp.clip(x_ragged, -0.5, 0.5))

    # bf16 exercises the dtype-aware (16-row) sublane alignment.
    x_bf16 = x.astype(jnp.bfloat16)
    out_bf16 = onnx_clip(x_bf16, min_val=min_val, max_val=max_val, force_pallas=True)
    jax.block_until_ready(out_bf16)
    assert out_bf16.dtype == jnp.bfloat16
    assert jnp.allclose(
        out_bf16.astype(jnp.float32),
        jnp.clip(x_bf16, min_val, max_val).astype(jnp.float32),
    )

    # Aliased (donated) variant: output written over the input pages.
    out_alias = onnx_clip(
        x, min_val=min_val, max_val=max_val, force_pallas=True, donate_input=True
    )
    jax.block_until_ready(out_alias)
    assert jnp.allclose(out_alias, ref)

    # Default path on a tiny input takes the XLA fast path (no pallas_call).
    out_fast = onnx_clip(x, min_val=min_val, max_val=max_val)
    jax.block_until_ready(out_fast)
    assert jnp.allclose(out_fast, ref)

    print("KERNEL_OK")
</pallas_src>

<mosaic_0001>
module attributes {stable_mosaic.version = 11 : i64} {
  func.func @_clip_kernel(%arg0: i32, %arg1: memref<8x256xf32, #tpu.memory_space<vmem>>, %arg2: memref<8x256xf32, #tpu.memory_space<vmem>>) attributes {dimension_semantics = [#tpu.dimension_semantics<parallel>], iteration_bounds = array<i64: 1>, scalar_prefetch = 0 : i64, scratch_operands = 0 : i64, tpu.core_type = #tpu.core_type<tc>, window_params = [{transform_indices = @transform_0, window_bounds = array<i64: 8, 256>}, {transform_indices = @transform_1, window_bounds = array<i64: 8, 256>}]} {
    %c0 = arith.constant 0 : index
    %c0_0 = arith.constant 0 : index
    %0 = vector.load %arg1[%c0, %c0_0] : memref<8x256xf32, #tpu.memory_space<vmem>>, vector<8x256xf32>
    %cst = arith.constant -1.000000e+00 : f32
    %1 = vector.broadcast %cst : f32 to vector<8x256xf32>
    %2 = arith.maximumf %0, %1 : vector<8x256xf32>
    %cst_1 = arith.constant 1.000000e+00 : f32
    %3 = vector.broadcast %cst_1 : f32 to vector<8x256xf32>
    %4 = arith.minimumf %2, %3 : vector<8x256xf32>
    %c0_2 = arith.constant 0 : index
    %c0_3 = arith.constant 0 : index
    %5 = vector.load %arg2[%c0_2, %c0_3] : memref<8x256xf32, #tpu.memory_space<vmem>>, vector<8x256xf32>
    tpu.vector_store %arg2[%c0_2, %c0_3], %4 {strides = array<i32>} : memref<8x256xf32, #tpu.memory_space<vmem>>, vector<8x256xf32>,
    return
  }
  func.func @transform_0(%arg0: i32) -> (i32, i32) {
    %c0_i32 = arith.constant 0 : i32
    %c0_i32_0 = arith.constant 0 : i32
    return %arg0, %c0_i32 : i32, i32
  }
  func.func @transform_1(%arg0: i32) -> (i32, i32) {
    %c0_i32 = arith.constant 0 : i32
    %c0_i32_0 = arith.constant 0 : i32
    return %arg0, %c0_i32 : i32, i32
  }
}

</mosaic_0001>

<bundles_post_ra>
// kernel: tpu_custom_call.1
= control target key start
LH: loop header
LB: loop body
LE: loop exit
PB: predicated region body
PF: predicated region fallthrough
CT: control target
= control target key end

     0   :  { %6 = vsyncpa [#allocation3], 0  ;;  %s132_s0 = inlined_call_operand.hbm [shape: f32[8,256], index: 0, kind: input, shape index: {}]   ;;  %s133_s1 = inlined_call_operand.hbm [shape: f32[8,256], index: 1, kind: output, shape index: {}]  }
   0x1   :  { %7 = vsyncpa [#allocation4], 0  ;;  %s96_s6 = smov [#allocation2]   ;;  %s48_s10 = scalar_lea.hbm %s132_s0, 256 }
   0x2   :  { %s14_s7 = sshll.u32 %s96_s6, 4  ;;  %p49_p0 = scmp.ne.s32.totalorder %s132_s0, %s48_s10  ;;  %s15_s7 = int_to_ptr.vmem [resolvable:$true] %s14_s7 }
   0x3   :  { %p52_p1 = scmp.lt.u32.totalorder %s48_s10, %s132_s0 }
   0x5   :  { %p54_p2 = pnand %p52_p1, %p49_p0 }
   0x7   :  { %57 = shalt.err (!%p54_p2)
}
   0x8   :  { %s58_s15 = scalar_lea.vmem %s15_s7, 256  ;;  %p63_p4 = scmp.lt.s32.totalorder %s15_s7, %s15_s7 }
   0x9   :  { %p59_p3 = scmp.ne.s32.totalorder %s15_s7, %s58_s15  ;;  %p64_p5 = scmp.lt.s32.totalorder %s58_s15, %s58_s15 }
   0xb   :  { %p65_p6 = por %p64_p5, %p63_p4 }
   0xd   :  { %p66_p7 = pnand %p65_p6, %p59_p3 }
   0xf   :  { %69 = shalt.err (!%p66_p7)
}
  0x10   :  { %17 = dma.hbm_to_vmem [thread:$0]  %s132_s0, 256, %s15_s7, [#allocation3]  }
  0x11   :  { %92 = dma.done.wait [#allocation3], 256  }
  0x12   :  { %93 = vsyncadd [#allocation3], 4294967040  ;;  %s97_s18 = smov [#allocation5]   ;;  %v21_v0 = vld [vmem:[#allocation2] sm:$0xff]  ;;  %v22_v1 = vld [vmem:[#allocation2 + $0x8] sm:$0xff] }
  0x13   :  { %s35_s19 = sshll.u32 %s97_s18, 4  ;;  %v44_v2 = vclamps-f32 %v21_v0, 1.0  ;;  %v45_v3 = vclamps-f32 %v22_v1, 1.0  ;;  %s36_s19 = int_to_ptr.vmem [resolvable:$true] %s35_s19 }
  0x14   :  { %s70_s20 = scalar_lea.vmem %s36_s19, 256  ;;  %p75_p9 = scmp.lt.s32.totalorder %s36_s19, %s36_s19 }
  0x15   :  { %27 = vst [vmem:[#allocation5] sm:$0xff] %v44_v2  ;;  %28 = vst [vmem:[#allocation5 + $0x8] sm:$0xff] %v45_v3  ;;  %p71_p8 = scmp.ne.s32.totalorder %s36_s19, %s70_s20  ;;  %p76_p10 = scmp.lt.s32.totalorder %s70_s20, %s70_s20 }
  0x17   :  { %p77_p11 = por %p76_p10, %p75_p9 }
  0x19   :  { %p78_p12 = pnand %p77_p11, %p71_p8 }
  0x1b   :  { %81 = shalt.err (!%p78_p12)
}
  0x1c   :  { %s82_s22 = scalar_lea.hbm %s133_s1, 256 }
  0x1d   :  { %p83_p13 = scmp.ne.s32.totalorder %s133_s1, %s82_s22  ;;  %p86_p0 = scmp.lt.u32.totalorder %s82_s22, %s133_s1 }
  0x1f   :  { %p88_p1 = pnand %p86_p0, %p83_p13 }
  0x21   :  { %91 = shalt.err (!%p88_p1)
}
  0x22   :  { %38 = dma.vmem_to_hbm [thread:$0]  %s36_s19, 256, %s133_s1, [#allocation4]  }
  0x23   :  { %94 = dma.done.wait [#allocation4], 256  }
  0x24   :  { %95 = vsyncadd [#allocation4], 4294967040 }
  0x25   :  { %42 = vsyncpa [#allocation3], 1 }
  0x26   :  { %43 = vsyncpa [#allocation4], 1 }

</bundles_post_ra>
